<compile_context>
chip_gen: v7x
topology: tpu7x:2x2x1
jax: 0.10.0
libtpu: 0.0.40
codegen_flags: <defaults>
</compile_context>

<pallas_src>
import functools

import jax
import jax.numpy as jnp
from jax.experimental import pallas as pl
from jax.experimental.pallas import tpu as pltpu

EPS = 1e-5  # PyTorch nn.LayerNorm default


def _layernorm_t(h, gamma, beta):
    """LayerNorm over the feature (sublane) axis of an (H, TILE_B) tile.
    h: (H, TILE_B) f32, gamma/beta: (H, 1) f32."""
    mu = jnp.mean(h, axis=0, keepdims=True)            # (1, TILE_B)
    d = h - mu
    var = jnp.mean(d * d, axis=0, keepdims=True)       # (1, TILE_B)
    return d * (jax.lax.rsqrt(var + EPS) * gamma) + beta


def critic_kernel(xt_ref, w_ref, v_ref, o_ref, *, hidden, num_critics):
    H = hidden
    f32 = jnp.float32
    mm_dtype = w_ref.dtype

    # Lane-dense activations: batch on lanes for the entire chain.
    xt = xt_ref[...]                                    # (F, TILE_B), matmul dtype

    qs = []
    for e in range(num_critics):                        # static unroll (E is 1 or 2)
        # Sublane-aligned views of the packed per-critic slab (offsets are
        # multiples of 8 because H % 8 == 0 and in_dim is padded).
        w1t = w_ref[e, 0:H, :]                          # (H, F)   layer-1 weight^T
        w2t = w_ref[e, H:2 * H, 0:H]                    # (H, H)   layer-2 weight^T
        w3r = w_ref[e, 2 * H:2 * H + 1, 0:H]            # (1, H)   value-head row
        b1, g1, be1 = v_ref[e, :, 0:1], v_ref[e, :, 1:2], v_ref[e, :, 2:3]
        b2, g2, be2 = v_ref[e, :, 3:4], v_ref[e, :, 4:5], v_ref[e, :, 5:6]
        b3 = v_ref[e, 0:1, 6:7]                         # (1, 1)

        # Layer 1: (H, F) @ (F, TILE_B) -> (H, TILE_B); f32 accumulation.
        h = jnp.dot(w1t, xt, preferred_element_type=f32) + b1
        h = jnp.maximum(_layernorm_t(h, g1, be1), 0.0)

        # Layer 2: (H, H) @ (H, TILE_B) -> (H, TILE_B).
        h = jnp.dot(w2t, h.astype(mm_dtype), preferred_element_type=f32) + b2
        h = jnp.maximum(_layernorm_t(h, g2, be2), 0.0)

        # Value head: (1, H) @ (H, TILE_B) -> lane-dense (1, TILE_B) row.
        q = jnp.dot(w3r, h.astype(mm_dtype), preferred_element_type=f32) + b3
        qs.append(q)

    o_ref[...] = jnp.concatenate(qs, axis=0).astype(o_ref.dtype)


def _pick_tile_b(batch):
    """Generation-aware batch tile: big single tile on 1-TC chips (v5e/v6e),
    >= 2 'parallel' grid steps on v7x (2 TensorCores per chip)."""
    b128 = max(128, ((batch + 127) // 128) * 128)
    try:
        kind = jax.devices()[0].device_kind.lower()
    except Exception:
        kind = ""
    if ("v7" in kind) or ("tpu7" in kind):
        half = ((b128 // 2 + 127) // 128) * 128
        return max(128, min(half, 2048))
    # v5e / v6e: per-grid-step overhead (~0.35 us) dominates -> fewest steps.
    return min(b128, 4096)


@functools.partial(jax.jit, static_argnames=("tile_b", "matmul_dtype"))
def _critic_forward_impl(x, w_slab, v_slab, *, tile_b, matmul_dtype):
    B, in_dim = x.shape
    E, w_rows, F = w_slab.shape
    H = v_slab.shape[1]
    assert H % 8 == 0 and w_rows == 2 * H + 8 and F >= H and F >= in_dim

    b_pad = pl.cdiv(B, tile_b) * tile_b
    # Lane-dense x DMA: pass x transposed (features, batch); pad features with
    # zero rows (annihilated by the zero-padded w1^T columns) and batch with
    # zero columns. Padded batch columns go through LayerNorm (finite, benign)
    # and are discarded by the wrapper slice below.
    xt = jnp.pad(x.astype(matmul_dtype),
                 ((0, b_pad - B), (0, F - in_dim))).T          # (F, b_pad)
    w = w_slab.astype(matmul_dtype)                            # matmul operands
    v = v_slab.astype(jnp.float32)                             # LN / bias math f32

    kernel = functools.partial(critic_kernel, hidden=H, num_critics=E)
    itemsize = jnp.dtype(matmul_dtype).itemsize
    cost = pl.CostEstimate(
        flops=2 * b_pad * E * (in_dim * H + H * H + H),
        transcendentals=2 * b_pad * E,                         # rsqrt per LN row
        bytes_accessed=(F * b_pad * itemsize + E * b_pad * 4
                        + w.size * itemsize + v.size * 4),
    )

    out = pl.pallas_call(
        kernel,
        out_shape=jax.ShapeDtypeStruct((E, b_pad), jnp.float32),
        grid=(b_pad // tile_b,),
        in_specs=[
            pl.BlockSpec((F, tile_b), lambda i: (0, i)),       # lane-dense x tile
            pl.BlockSpec(w.shape, lambda i: (0, 0, 0)),        # weights VMEM-resident
            pl.BlockSpec(v.shape, lambda i: (0, 0, 0)),        # vectors VMEM-resident
        ],
        out_specs=pl.BlockSpec((E, tile_b), lambda i: (0, i)),  # lane-dense output
        compiler_params=pltpu.CompilerParams(
            dimension_semantics=("parallel",)),                 # shard on v7x TCs
        cost_estimate=cost,
    )(xt, w, v)

    return out[:, :B].reshape(E, B, 1)


def critic_forward(x, w_slab, v_slab, *, tile_b=None, matmul_dtype=jnp.float32):
    """Returns (num_critics, B, 1). With num_critics=1, out[0] is the module's
    (B, 1) output. matmul_dtype=bf16 is valid on v5e/v6e/v7x (f32 accumulation);
    keep f32 (default) for exact semantics."""
    if tile_b is None:
        tile_b = _pick_tile_b(x.shape[0])
    return _critic_forward_impl(x, w_slab, v_slab,
                                tile_b=int(tile_b), matmul_dtype=matmul_dtype)


# ----------------------------- parameters ----------------------------------

def init_params(key, in_dim, hidden):
    """Deterministic synthetic parameters. Linear weights stored as (in, out)."""
    ks = jax.random.split(key, 10)
    H = hidden
    w1 = jax.random.normal(ks[0], (in_dim, H), jnp.float32) / jnp.sqrt(in_dim)
    b1 = jax.random.normal(ks[1], (H,), jnp.float32) * 0.01
    g1 = 1.0 + 0.1 * jax.random.normal(ks[2], (H,), jnp.float32)
    be1 = 0.05 * jax.random.normal(ks[3], (H,), jnp.float32)
    w2 = jax.random.normal(ks[4], (H, H), jnp.float32) / jnp.sqrt(H)
    b2 = jax.random.normal(ks[5], (H,), jnp.float32) * 0.01
    g2 = 1.0 + 0.1 * jax.random.normal(ks[6], (H,), jnp.float32)
    be2 = 0.05 * jax.random.normal(ks[7], (H,), jnp.float32)
    w3 = jax.random.normal(ks[8], (H, 1), jnp.float32) / jnp.sqrt(H)
    b3 = jax.random.normal(ks[9], ()) * 0.01
    return (w1, b1, g1, be1, w2, b2, g2, be2, w3, b3)


def pack_params(params_per_critic, in_dim, hidden):
    """Pack E critics into 2 slabs:
       w_slab (E, 2H+8, F): rows [0:H]=w1^T, [H:2H]=w2^T, [2H]=w3 row  (F=max(in_dim_pad,H))
       v_slab (E, H, 8):    cols b1,g1,be1,b2,g2,be2,[b3@row0],0 (column layout so
                            vectors broadcast along the lane/batch axis in-kernel)."""
    H = hidden
    assert H % 8 == 0, "hidden dim must be a multiple of 8 (sublane alignment)"
    Dp = ((in_dim + 7) // 8) * 8
    F = max(Dp, H)
    w_list, v_list = [], []
    for (w1, b1, g1, be1, w2, b2, g2, be2, w3, b3) in params_per_critic:
        w1t = jnp.zeros((H, F), jnp.float32).at[:, :in_dim].set(w1.T)
        w2t = jnp.zeros((H, F), jnp.float32).at[:, :H].set(w2.T)
        w3r = jnp.zeros((8, F), jnp.float32).at[0, :H].set(w3[:, 0])
        w_list.append(jnp.concatenate([w1t, w2t, w3r], axis=0))
        v = jnp.zeros((H, 8), jnp.float32)
        v = v.at[:, 0].set(b1).at[:, 1].set(g1).at[:, 2].set(be1)
        v = v.at[:, 3].set(b2).at[:, 4].set(g2).at[:, 5].set(be2)
        v = v.at[0, 6].set(b3)
        v_list.append(v)
    return jnp.stack(w_list), jnp.stack(v_list)


def critic_reference(x, params):
    """Pure-JAX reference mirroring the PyTorch forward pass."""
    (w1, b1, g1, be1, w2, b2, g2, be2, w3, b3) = params

    def ln(h, g, b):
        mu = jnp.mean(h, axis=-1, keepdims=True)
        var = jnp.mean((h - mu) ** 2, axis=-1, keepdims=True)
        return (h - mu) * jax.lax.rsqrt(var + EPS) * g + b

    h = jnp.maximum(ln(x @ w1 + b1, g1, be1), 0.0)
    h = jnp.maximum(ln(h @ w2 + b2, g2, be2), 0.0)
    return h @ w3 + b3


if __name__ == "__main__":
    key = jax.random.PRNGKey(0)
    kx, k1, k2 = jax.random.split(key, 3)

    obs_dim, action_dim, hidden = 24, 8, 32
    in_dim = obs_dim + action_dim
    batch = 500  # not a tile multiple -> exercises batch padding

    # x = concat(obs, action) along features — the Critic consumes it directly.
    x = jax.random.normal(kx, (batch, in_dim), jnp.float32)
    params_q1 = init_params(k1, in_dim, hidden)
    params_q2 = init_params(k2, in_dim, hidden)
    ref1 = critic_reference(x, params_q1)
    ref2 = critic_reference(x, params_q2)

    # Single critic (E=1): exact original-module semantics, f32 path.
    w1s, v1s = pack_params([params_q1], in_dim, hidden)
    out1 = jax.block_until_ready(critic_forward(x, w1s, v1s))
    assert out1.shape == (1, batch, 1)
    assert jnp.allclose(out1[0], ref1, atol=1e-3, rtol=1e-3)

    # Twin-critic fusion (E=2): both Qs from one x DMA / one launch, f32 path.
    w2s, v2s = pack_params([params_q1, params_q2], in_dim, hidden)
    out12 = jax.block_until_ready(critic_forward(x, w2s, v2s))
    assert out12.shape == (2, batch, 1)
    assert jnp.allclose(out12[0], ref1, atol=1e-3, rtol=1e-3)
    assert jnp.allclose(out12[1], ref2, atol=1e-3, rtol=1e-3)

    # bf16 matmul-operand path (valid on v5e/v6e/v7x; f32 accumulation).
    out_bf16 = jax.block_until_ready(
        critic_forward(x, w2s, v2s, matmul_dtype=jnp.bfloat16))
    assert jnp.allclose(out_bf16, out12, atol=2e-1, rtol=2e-1)

    print("KERNEL_OK")
</pallas_src>

<mosaic_0001>
module attributes {stable_mosaic.version = 11 : i64} {
  func.func @critic_kernel(%arg0: i32, %arg1: memref<32x512xf32, #tpu.memory_space<vmem>>, %arg2: memref<1x72x32xf32, #tpu.memory_space<vmem>>, %arg3: memref<1x32x8xf32, #tpu.memory_space<vmem>>, %arg4: memref<1x512xf32, #tpu.memory_space<vmem>>) attributes {dimension_semantics = [#tpu.dimension_semantics<parallel>], iteration_bounds = array<i64: 1>, scalar_prefetch = 0 : i64, scratch_operands = 0 : i64, tpu.core_type = #tpu.core_type<tc>, window_params = [{transform_indices = @transform_0, window_bounds = array<i64: 32, 512>}, {pipeline_mode = #tpu.pipeline_mode<synchronous>, transform_indices = @transform_1, window_bounds = array<i64: 1, 72, 32>}, {pipeline_mode = #tpu.pipeline_mode<synchronous>, transform_indices = @transform_2, window_bounds = array<i64: 1, 32, 8>}, {transform_indices = @transform_3, window_bounds = array<i64: 1, 512>}]} {
    %c0 = arith.constant 0 : index
    %c0_0 = arith.constant 0 : index
    %0 = vector.load %arg1[%c0, %c0_0] : memref<32x512xf32, #tpu.memory_space<vmem>>, vector<32x512xf32>
    %c0_1 = arith.constant 0 : index
    %c0_2 = arith.constant 0 : index
    %c0_3 = arith.constant 0 : index
    %1 = vector.load %arg2[%c0_1, %c0_2, %c0_3] : memref<1x72x32xf32, #tpu.memory_space<vmem>>, vector<1x32x32xf32>
    %2 = vector.shape_cast %1 : vector<1x32x32xf32> to vector<32x32xf32>
    %c0_4 = arith.constant 0 : index
    %c32 = arith.constant 32 : index
    %c0_5 = arith.constant 0 : index
    %3 = vector.load %arg2[%c0_4, %c32, %c0_5] : memref<1x72x32xf32, #tpu.memory_space<vmem>>, vector<1x32x32xf32>
    %4 = vector.shape_cast %3 : vector<1x32x32xf32> to vector<32x32xf32>
    %c0_6 = arith.constant 0 : index
    %c64 = arith.constant 64 : index
    %c0_7 = arith.constant 0 : index
    %5 = vector.load %arg2[%c0_6, %c64, %c0_7] : memref<1x72x32xf32, #tpu.memory_space<vmem>>, vector<1x1x32xf32>
    %6 = vector.shape_cast %5 : vector<1x1x32xf32> to vector<1x32xf32>
    %c0_8 = arith.constant 0 : index
    %c0_9 = arith.constant 0 : index
    %c0_10 = arith.constant 0 : index
    %7 = vector.load %arg3[%c0_8, %c0_9, %c0_10] : memref<1x32x8xf32, #tpu.memory_space<vmem>>, vector<1x32x1xf32>
    %8 = vector.shape_cast %7 : vector<1x32x1xf32> to vector<32x1xf32>
    %c0_11 = arith.constant 0 : index
    %c0_12 = arith.constant 0 : index
    %c1 = arith.constant 1 : index
    %9 = vector.load %arg3[%c0_11, %c0_12, %c1] : memref<1x32x8xf32, #tpu.memory_space<vmem>>, vector<1x32x1xf32>
    %10 = vector.shape_cast %9 : vector<1x32x1xf32> to vector<32x1xf32>
    %c0_13 = arith.constant 0 : index
    %c0_14 = arith.constant 0 : index
    %c2 = arith.constant 2 : index
    %11 = vector.load %arg3[%c0_13, %c0_14, %c2] : memref<1x32x8xf32, #tpu.memory_space<vmem>>, vector<1x32x1xf32>
    %12 = vector.shape_cast %11 : vector<1x32x1xf32> to vector<32x1xf32>
    %c0_15 = arith.constant 0 : index
    %c0_16 = arith.constant 0 : index
    %c3 = arith.constant 3 : index
    %13 = vector.load %arg3[%c0_15, %c0_16, %c3] : memref<1x32x8xf32, #tpu.memory_space<vmem>>, vector<1x32x1xf32>
    %14 = vector.shape_cast %13 : vector<1x32x1xf32> to vector<32x1xf32>
    %c0_17 = arith.constant 0 : index
    %c0_18 = arith.constant 0 : index
    %c4 = arith.constant 4 : index
    %15 = vector.load %arg3[%c0_17, %c0_18, %c4] : memref<1x32x8xf32, #tpu.memory_space<vmem>>, vector<1x32x1xf32>
    %16 = vector.shape_cast %15 : vector<1x32x1xf32> to vector<32x1xf32>
    %c0_19 = arith.constant 0 : index
    %c0_20 = arith.constant 0 : index
    %c5 = arith.constant 5 : index
    %17 = vector.load %arg3[%c0_19, %c0_20, %c5] : memref<1x32x8xf32, #tpu.memory_space<vmem>>, vector<1x32x1xf32>
    %18 = vector.shape_cast %17 : vector<1x32x1xf32> to vector<32x1xf32>
    %c0_21 = arith.constant 0 : index
    %c0_22 = arith.constant 0 : index
    %c6 = arith.constant 6 : index
    %19 = vector.load %arg3[%c0_21, %c0_22, %c6] : memref<1x32x8xf32, #tpu.memory_space<vmem>>, vector<1x1x1xf32>
    %20 = vector.shape_cast %19 : vector<1x1x1xf32> to vector<1x1xf32>
    %cst = arith.constant dense<0.000000e+00> : vector<32x512xf32>
    %21 = tpu.matmul %2, %0, %cst {dimension_numbers = #tpu.dot_dimension_numbers<[1], [0], [0], [1], [0, 0, 1, 1], [], []>} : vector<32x32xf32>, vector<32x512xf32>, vector<32x512xf32> -> vector<32x512xf32>
    %22 = vector.broadcast %8 : vector<32x1xf32> to vector<32x512xf32>
    %23 = arith.addf %21, %22 : vector<32x512xf32>
    %cst_23 = arith.constant dense<0.000000e+00> : vector<512xf32>
    %24 = vector.multi_reduction <add>, %23, %cst_23 [0] : vector<32x512xf32> to vector<512xf32>
    %25 = vector.shape_cast %24 : vector<512xf32> to vector<1x512xf32>
    %cst_24 = arith.constant 3.200000e+01 : f32
    %26 = vector.broadcast %cst_24 : f32 to vector<1x512xf32>
    %27 = arith.divf %25, %26 : vector<1x512xf32>
    %28 = vector.broadcast %27 : vector<1x512xf32> to vector<32x512xf32>
    %29 = arith.subf %23, %28 : vector<32x512xf32>
    %30 = arith.mulf %29, %29 : vector<32x512xf32>
    %cst_25 = arith.constant dense<0.000000e+00> : vector<512xf32>
    %31 = vector.multi_reduction <add>, %30, %cst_25 [0] : vector<32x512xf32> to vector<512xf32>
    %32 = vector.shape_cast %31 : vector<512xf32> to vector<1x512xf32>
    %cst_26 = arith.constant 3.200000e+01 : f32
    %33 = vector.broadcast %cst_26 : f32 to vector<1x512xf32>
    %34 = arith.divf %32, %33 : vector<1x512xf32>
    %cst_27 = arith.constant 9.99999974E-6 : f32
    %35 = vector.broadcast %cst_27 : f32 to vector<1x512xf32>
    %36 = arith.addf %34, %35 : vector<1x512xf32>
    %37 = math.rsqrt %36 : vector<1x512xf32>
    %38 = vector.broadcast %37 : vector<1x512xf32> to vector<32x512xf32>
    %39 = vector.broadcast %10 : vector<32x1xf32> to vector<32x512xf32>
    %40 = arith.mulf %38, %39 : vector<32x512xf32>
    %41 = arith.mulf %29, %40 : vector<32x512xf32>
    %42 = vector.broadcast %12 : vector<32x1xf32> to vector<32x512xf32>
    %43 = arith.addf %41, %42 : vector<32x512xf32>
    %cst_28 = arith.constant 0.000000e+00 : f32
    %44 = vector.broadcast %cst_28 : f32 to vector<32x512xf32>
    %45 = arith.maximumf %43, %44 : vector<32x512xf32>
    %cst_29 = arith.constant dense<0.000000e+00> : vector<32x512xf32>
    %46 = tpu.matmul %4, %45, %cst_29 {dimension_numbers = #tpu.dot_dimension_numbers<[1], [0], [0], [1], [0, 0, 1, 1], [], []>} : vector<32x32xf32>, vector<32x512xf32>, vector<32x512xf32> -> vector<32x512xf32>
    %47 = vector.broadcast %14 : vector<32x1xf32> to vector<32x512xf32>
    %48 = arith.addf %46, %47 : vector<32x512xf32>
    %cst_30 = arith.constant dense<0.000000e+00> : vector<512xf32>
    %49 = vector.multi_reduction <add>, %48, %cst_30 [0] : vector<32x512xf32> to vector<512xf32>
    %50 = vector.shape_cast %49 : vector<512xf32> to vector<1x512xf32>
    %cst_31 = arith.constant 3.200000e+01 : f32
    %51 = vector.broadcast %cst_31 : f32 to vector<1x512xf32>
    %52 = arith.divf %50, %51 : vector<1x512xf32>
    %53 = vector.broadcast %52 : vector<1x512xf32> to vector<32x512xf32>
    %54 = arith.subf %48, %53 : vector<32x512xf32>
    %55 = arith.mulf %54, %54 : vector<32x512xf32>
    %cst_32 = arith.constant dense<0.000000e+00> : vector<512xf32>
    %56 = vector.multi_reduction <add>, %55, %cst_32 [0] : vector<32x512xf32> to vector<512xf32>
    %57 = vector.shape_cast %56 : vector<512xf32> to vector<1x512xf32>
    %cst_33 = arith.constant 3.200000e+01 : f32
    %58 = vector.broadcast %cst_33 : f32 to vector<1x512xf32>
    %59 = arith.divf %57, %58 : vector<1x512xf32>
    %cst_34 = arith.constant 9.99999974E-6 : f32
    %60 = vector.broadcast %cst_34 : f32 to vector<1x512xf32>
    %61 = arith.addf %59, %60 : vector<1x512xf32>
    %62 = math.rsqrt %61 : vector<1x512xf32>
    %63 = vector.broadcast %62 : vector<1x512xf32> to vector<32x512xf32>
    %64 = vector.broadcast %16 : vector<32x1xf32> to vector<32x512xf32>
    %65 = arith.mulf %63, %64 : vector<32x512xf32>
    %66 = arith.mulf %54, %65 : vector<32x512xf32>
    %67 = vector.broadcast %18 : vector<32x1xf32> to vector<32x512xf32>
    %68 = arith.addf %66, %67 : vector<32x512xf32>
    %cst_35 = arith.constant 0.000000e+00 : f32
    %69 = vector.broadcast %cst_35 : f32 to vector<32x512xf32>
    %70 = arith.maximumf %68, %69 : vector<32x512xf32>
    %cst_36 = arith.constant dense<0.000000e+00> : vector<1x512xf32>
    %71 = tpu.matmul %6, %70, %cst_36 {dimension_numbers = #tpu.dot_dimension_numbers<[1], [0], [0], [1], [0, 0, 1, 1], [], []>} : vector<1x32xf32>, vector<32x512xf32>, vector<1x512xf32> -> vector<1x512xf32>
    %72 = vector.broadcast %20 : vector<1x1xf32> to vector<1x512xf32>
    %73 = arith.addf %71, %72 : vector<1x512xf32>
    %c0_37 = arith.constant 0 : index
    %c0_38 = arith.constant 0 : index
    %74 = vector.load %arg4[%c0_37, %c0_38] : memref<1x512xf32, #tpu.memory_space<vmem>>, vector<1x512xf32>
    tpu.vector_store %arg4[%c0_37, %c0_38], %73 {strides = array<i32>} : memref<1x512xf32, #tpu.memory_space<vmem>>, vector<1x512xf32>,
    return
  }
  func.func @transform_0(%arg0: i32) -> (i32, i32) {
    %c0_i32 = arith.constant 0 : i32
    %c0_i32_0 = arith.constant 0 : i32
    return %c0_i32, %arg0 : i32, i32
  }
  func.func @transform_1(%arg0: i32) -> (i32, i32, i32) {
    %c0_i32 = arith.constant 0 : i32
    %c0_i32_0 = arith.constant 0 : i32
    %c0_i32_1 = arith.constant 0 : i32
    %c0_i32_2 = arith.constant 0 : i32
    return %c0_i32, %c0_i32_0, %c0_i32_1 : i32, i32, i32
  }
  func.func @transform_2(%arg0: i32) -> (i32, i32, i32) {
    %c0_i32 = arith.constant 0 : i32
    %c0_i32_0 = arith.constant 0 : i32
    %c0_i32_1 = arith.constant 0 : i32
    %c0_i32_2 = arith.constant 0 : i32
    return %c0_i32, %c0_i32_0, %c0_i32_1 : i32, i32, i32
  }
  func.func @transform_3(%arg0: i32) -> (i32, i32) {
    %c0_i32 = arith.constant 0 : i32
    %c0_i32_0 = arith.constant 0 : i32
    return %c0_i32, %arg0 : i32, i32
  }
}

</mosaic_0001>

<bundles_post_ra>
// kernel: _critic_forward_impl.1
= control target key start
LH: loop header
LB: loop body
LE: loop exit
PB: predicated region body
PF: predicated region fallthrough
CT: control target
= control target key end

     0   :  { %v1187_v3 = vmov 0.0   ;;  %v1188_v8 = vmov 0   ;;  %vm64_vm0 = vcmask 261120   ;;  %v1189_v32 = vmov 1   ;;  %s1609_s0 = inlined_call_operand.vmem [shape: f32[32,512], index: 0, kind: input, shape index: {}]   ;;  %s1610_s2 = inlined_call_operand.vmem [shape: f32[1,32,8], index: 2, kind: input, shape index: {}]   ;;  %s1611_s1 = inlined_call_operand.vmem [shape: f32[1,72,32], index: 1, kind: input, shape index: {}]   ;;  %s1612_s3 = inlined_call_operand.vmem [shape: f32[1,512], index: 3, kind: output, shape index: {}]  }
   0x1   :  { %v15_v0 = vld [vmem:[%s1609_s0 + $0x8] sm:$0xff]  ;;  %v17_v2 = vld [vmem:[%s1609_s0 + $0x18] sm:$0xff]  ;;  %141 = vmatprep.mubr.f32.mxu0 %v1187_v3  ;;  %230 = vmatprep.mubr.f32.mxu1 %v1187_v3  ;;  %v14_v6 = vld [vmem:[%s1609_s0] sm:$0xff]  ;;  %v1190_v35 = vmov 2   ;;  %v1191_v36 = vmov 3   ;;  %v1192_v37 = vmov 4  }
   0x2   :  { %v19_v1 = vld [vmem:[%s1609_s0 + $0x28] sm:$0xff]  ;;  %v21_v5 = vld [vmem:[%s1609_s0 + $0x38] sm:$0xff]  ;;  %v18_v7 = vld [vmem:[%s1609_s0 + $0x20] sm:$0xff]  ;;  %1157 = vset.pattern.permute.xlu0 %v1188_v8  ;;  %1158 = vset.pattern.permute.xlu1 %v1188_v8  ;;  %v1193_v38 = vmov 5  }
   0x3   :  { %v1100_v4 = vpack.c.bf16 %v19_v1, %v15_v0  ;;  %v1108_v9 = vpack.c.bf16 %v21_v5, %v17_v2  ;;  %v1102_v10 = vpack.c.bf16 %v18_v7, %v14_v6  ;;  %v16_v11 = vld [vmem:[%s1609_s0 + $0x10] sm:$0xff]  ;;  %v23_v13 = vld [vmem:[%s1609_s0 + $0x48] sm:$0xff]  ;;  %v25_v16 = vld [vmem:[%s1609_s0 + $0x58] sm:$0xff] }
   0x4   :  { %v20_v12 = vld [vmem:[%s1609_s0 + $0x30] sm:$0xff]  ;;  %v27_v15 = vld [vmem:[%s1609_s0 + $0x68] sm:$0xff]  ;;  %v29_v17 = vld [vmem:[%s1609_s0 + $0x78] sm:$0xff] }
   0x5   :  { %1101 = vmatprep.subr.bf16.mxu0 %v1100_v4  ;;  %v1110_v14 = vpack.c.bf16 %v20_v12, %v16_v11  ;;  %1109 = vmatprep.subr.bf16.mxu1 %v1108_v9  ;;  %v1104_v18 = vpack.c.bf16 %v27_v15, %v23_v13  ;;  %v1112_v19 = vpack.c.bf16 %v29_v17, %v25_v16  ;;  %v22_v20 = vld [vmem:[%s1609_s0 + $0x40] sm:$0xff]  ;;  %v24_v22 = vld [vmem:[%s1609_s0 + $0x50] sm:$0xff]  ;;  %v1280_v29 = vld [vmem:[%s1610_s2 + $0x8] sm:$0xff] }
   0x6   :  { %1103 = vmatpush1.bf16.msra.mxu0 %v1102_v10  ;;  %v26_v21 = vld [vmem:[%s1609_s0 + $0x60] sm:$0xff]  ;;  %v28_v24 = vld [vmem:[%s1609_s0 + $0x70] sm:$0xff]  ;;  %v42_v30 = vld [vmem:[%s1610_s2 + $0x18] sm:$0xff] }
   0x7   :  { %1111 = vmatpush1.bf16.msra.mxu1 %v1110_v14  ;;  %v1106_v23 = vpack.c.bf16 %v26_v21, %v22_v20  ;;  %1105 = vmatprep.subr.bf16.mxu0 %v1104_v18  ;;  %v1114_v25 = vpack.c.bf16 %v28_v24, %v24_v22  ;;  %v39_v26 = vld [vmem:[%s1610_s2] sm:$0xff]  ;;  %v1272_v27 = vld [vmem:[%s1610_s2 + $0x10] sm:$0xff]  ;;  %v31_v31 = vld [vmem:[%s1611_s1 + $0x8] sm:$0xff] }
   0x8   :  { %1113 = vmatprep.subr.bf16.mxu1 %v1112_v19  ;;  %46 = vperm.xlu0 %1157, %v39_v26   ;;  %v30_v28 = vld [vmem:[%s1611_s1] sm:$0xff]  ;;  %v32_v33 = vld [vmem:[%s1611_s1 + $0x10] sm:$0xff]  ;;  %v33_v34 = vld [vmem:[%s1611_s1 + $0x18] sm:$0xff] }
   0x9   :  { %56 = vperm.xlu1 %1158, %v1272_v27  }
   0xa   :  { %1107 = vmatpush1.bf16.msra.mxu0 %v1106_v23 }
   0xb   :  { %1115 = vmatpush1.bf16.msra.mxu1 %v1114_v25 }
   0xc   :  { %51 = vperm.xlu0 %1157, %v1280_v29  }
   0xd   :  { %1082 = vmatmul.mubr.msk.f32.vlgmr.msra.gmra.mrb[0].mxu0 %vm64_vm0, %v30_v28  ;;  %61 = vperm.xlu1 %1158, %v42_v30  }
   0xe   :  { %1086 = vmatmul.mubr.msk.f32.vlgmr.msra.gmra.mrb[0].mxu1 %vm64_vm0, %v30_v28  ;;  %147 = vmatprep.mubr.f32.mxu0 %v1187_v3 }
   0xf   :  { %236 = vmatprep.mubr.f32.mxu1 %v1187_v3 }
  0x10   :  { %1159 = vset.pattern.permute.xlu0 %v1189_v32 }
  0x11   :  { %1083 = vmatmul.mubr.msk.f32.gmra.mrb[2].mxu0 %vm64_vm0, %v31_v31  ;;  %1160 = vset.pattern.permute.xlu1 %v1189_v32 }
  0x12   :  { %1087 = vmatmul.mubr.msk.f32.gmra.mrb[2].mxu1 %vm64_vm0, %v31_v31  ;;  %153 = vmatprep.mubr.f32.mxu0 %v1187_v3 }
  0x13   :  { %242 = vmatprep.mubr.f32.mxu1 %v1187_v3  ;;  %381 = vperm.xlu1 %1160, %v1280_v29  }
  0x14   :  { %377 = vperm.xlu0 %1159, %v39_v26  }
  0x15   :  { %1084 = vmatmul.mubr.msk.f32.gmra.mrb[4].mxu0 %vm64_vm0, %v32_v33 }
  0x16   :  { %1088 = vmatmul.mubr.msk.f32.gmra.mrb[4].mxu1 %vm64_vm0, %v32_v33  ;;  %159 = vmatprep.mubr.f32.mxu0 %v1187_v3 }
  0x17   :  { %248 = vmatprep.mubr.f32.mxu1 %v1187_v3  ;;  %385 = vperm.xlu1 %1160, %v1272_v27  }
  0x18   :  { %389 = vperm.xlu0 %1159, %v42_v30  }
  0x19   :  { %1085 = vmatmul.mubr.msk.f32.gmra.mrb[6].mxu0 %vm64_vm0, %v33_v34 }
  0x1a   :  { %1089 = vmatmul.mubr.msk.f32.gmra.mrb[6].mxu1 %vm64_vm0, %v33_v34  ;;  %564 = vmatprep.mubr.f32.mxu0 %v1187_v3 }
  0x1b   :  { %653 = vmatprep.mubr.f32.mxu1 %v1187_v3  ;;  %1161 = vset.pattern.permute.xlu1 %v1190_v35 }
  0x1c   :  { %1162 = vset.pattern.permute.xlu0 %v1190_v35  ;;  %425 = vperm.xlu1 %1161, %v39_v26  }
  0x1d   :  { %429 = vperm.xlu0 %1162, %v1280_v29  }
  0x20   :  { %433 = vperm.xlu1 %1161, %v1272_v27  }
  0x21   :  { %1163 = vset.pattern.permute.xlu0 %v1191_v36 }
  0x22   :  { %473 = vperm.xlu0 %1163, %v39_v26  }
  0x24   :  { %437 = vperm.xlu1 %1161, %v42_v30  }
  0x26   :  { %485 = vperm.xlu0 %1163, %v42_v30  }
  0x28   :  { %1164 = vset.pattern.permute.xlu1 %v1191_v36 }
  0x29   :  { %477 = vperm.xlu1 %1164, %v1280_v29  }
  0x2a   :  { %1166 = vset.pattern.permute.xlu0 %v1192_v37 }
  0x2b   :  { %803 = vperm.xlu0 %1166, %v1280_v29  }
  0x2d   :  { %481 = vperm.xlu1 %1164, %v1272_v27  }
  0x2f   :  { %1167 = vset.pattern.permute.xlu0 %v1193_v38 }
  0x30   :  { %847 = vperm.xlu0 %1167, %v39_v26  }
  0x31   :  { %1165 = vset.pattern.permute.xlu1 %v1192_v37 }
  0x32   :  { %799 = vperm.xlu1 %1165, %v39_v26  }
  0x34   :  { %859 = vperm.xlu0 %1167, %v42_v30  }
  0x36   :  { %807 = vperm.xlu1 %1165, %v1272_v27  }
  0x3a   :  { %811 = vperm.xlu1 %1165, %v42_v30  }
  0x3e   :  { %1168 = vset.pattern.permute.xlu1 %v1193_v38 }
  0x3f   :  { %851 = vperm.xlu1 %1168, %v1280_v29  }
  0x43   :  { %855 = vperm.xlu1 %1168, %v1272_v27  }
  0x87   :  { %v47_v39 = vpop.permute.xlu0 %46 }
  0x88   :  { %v57_v53 = vpop.permute.xlu1 %56 }
  0x8b   :  { %v52_v44 = vpop.permute.xlu0 %51 }
  0x8c   :  { %v62_v9 = vpop.permute.xlu1 %61 }
  0xe0   :  { %v143_v40 = vpop.f32.mrb[0].mxu0 }
  0xe1   :  { %v232_v41 = vpop.f32.mrb[0].mxu1  ;;  %v145_v42 = vpop.f32.mrb[1].mxu0  ;;  %v1321_v46 = vadd.f32 %v143_v40, %v47_v39 }
  0xe2   :  { %v234_v43 = vpop.f32.mrb[1].mxu1  ;;  %v1325_v50 = vadd.f32 %v232_v41, %v47_v39  ;;  %v1327_v51 = vadd.f32 %v145_v42, %v47_v39 }
  0xe3   :  { %v1333_v56 = vadd.f32 %v234_v43, %v47_v39 }
  0xe4   :  { %v149_v45 = vpop.f32.mrb[2].mxu0 }
  0xe5   :  { %v1323_v47 = vadd.f32 %v149_v45, %v52_v44  ;;  %v238_v48 = vpop.f32.mrb[2].mxu1  ;;  %v151_v49 = vpop.f32.mrb[3].mxu0 }
  0xe6   :  { %v1329_v52 = vadd.f32 %v238_v48, %v52_v44  ;;  %v1331_v54 = vadd.f32 %v151_v49, %v52_v44  ;;  %v240_v55 = vpop.f32.mrb[3].mxu1 }
  0xe7   :  { %v255_v57 = vadd.f32 %v1323_v47, %v1321_v46  ;;  %v1337_v58 = vadd.f32 %v240_v55, %v52_v44 }
  0xe8   :  { %v273_v59 = vadd.f32 %v1329_v52, %v1325_v50  ;;  %v264_v60 = vadd.f32 %v1331_v54, %v1327_v51  ;;  %v155_v61 = vpop.f32.mrb[4].mxu0 }
  0xe9   :  { %v282_v62 = vadd.f32 %v1337_v58, %v1333_v56  ;;  %v156_v63 = vadd.f32 %v155_v61, %v57_v53  ;;  %v244_v0 = vpop.f32.mrb[4].mxu1  ;;  %v157_v1 = vpop.f32.mrb[5].mxu0 }
  0xea   :  { %v245_v2 = vadd.f32 %v244_v0, %v57_v53  ;;  %v1346_v4 = vadd.f32 %v157_v1, %v57_v53  ;;  %v246_v5 = vpop.f32.mrb[5].mxu1 }
  0xeb   :  { %v256_v6 = vadd.f32 %v255_v57, %v156_v63  ;;  %v1348_v7 = vadd.f32 %v246_v5, %v57_v53 }
  0xec   :  { %v274_v8 = vadd.f32 %v273_v59, %v245_v2  ;;  %v265_v10 = vadd.f32 %v264_v60, %v1346_v4  ;;  %v161_v11 = vpop.f32.mrb[6].mxu0 }
  0xed   :  { %v283_v12 = vadd.f32 %v282_v62, %v1348_v7  ;;  %v162_v13 = vadd.f32 %v161_v11, %v62_v9  ;;  %v250_v14 = vpop.f32.mrb[6].mxu1  ;;  %v163_v15 = vpop.f32.mrb[7].mxu0 }
  0xee   :  { %v251_v16 = vadd.f32 %v250_v14, %v62_v9  ;;  %v164_v17 = vadd.f32 %v163_v15, %v62_v9  ;;  %v252_v18 = vpop.f32.mrb[7].mxu1 }
  0xef   :  { %v257_v19 = vadd.f32 %v256_v6, %v162_v13  ;;  %v1352_v20 = vadd.f32 %v252_v18, %v62_v9 }
  0xf0   :  { %v275_v21 = vadd.f32 %v274_v8, %v251_v16  ;;  %v266_v22 = vadd.f32 %v265_v10, %v164_v17 }
  0xf1   :  { %v258_v23 = vrot.slane %v257_v19, 4  ;;  %v284_v24 = vadd.f32 %v283_v12, %v1352_v20 }
  0xf2   :  { %v276_v25 = vrot.slane %v275_v21, 4  ;;  %v267_v26 = vrot.slane %v266_v22, 4 }
  0xf3   :  { %v259_v27 = vadd.f32 %v258_v23, %v257_v19  ;;  %v285_v28 = vrot.slane %v284_v24, 4 }
  0xf4   :  { %v277_v29 = vadd.f32 %v276_v25, %v275_v21  ;;  %v268_v30 = vadd.f32 %v267_v26, %v266_v22 }
  0xf5   :  { %v260_v31 = vrot.slane %v259_v27, 2  ;;  %v286_v32 = vadd.f32 %v285_v28, %v284_v24 }
  0xf6   :  { %v278_v33 = vrot.slane %v277_v29, 2  ;;  %v269_v34 = vrot.slane %v268_v30, 2 }
  0xf7   :  { %v261_v35 = vadd.f32 %v260_v31, %v259_v27  ;;  %v287_v36 = vrot.slane %v286_v32, 2 }
  0xf8   :  { %v279_v37 = vadd.f32 %v278_v33, %v277_v29  ;;  %v270_v38 = vadd.f32 %v269_v34, %v268_v30 }
  0xf9   :  { %v262_v39 = vrot.slane %v261_v35, 1  ;;  %v288_v40 = vadd.f32 %v287_v36, %v286_v32 }
  0xfa   :  { %v280_v41 = vrot.slane %v279_v37, 1  ;;  %v271_v42 = vrot.slane %v270_v38, 1 }
  0xfb   :  { %v263_v43 = vadd.f32 %v262_v39, %v261_v35  ;;  %v289_v44 = vrot.slane %v288_v40, 1 }
  0xfc   :  { %v281_v45 = vadd.f32 %v280_v41, %v279_v37  ;;  %v272_v48 = vadd.f32 %v271_v42, %v270_v38 }
  0xfd   :  { %v292_v49 = vmul.f32 0.03125, %v263_v43  ;;  %v290_v57 = vadd.f32 %v289_v44, %v288_v40 }
  0xfe   :  { %v294_v53 = vmul.f32 0.03125, %v281_v45  ;;  %v293_v55 = vmul.f32 0.03125, %v272_v48  ;;  %v382_v48 = vpop.permute.xlu1 %381 }
  0xff   :  { %v1356_v59 = vsub.f32 %v1321_v46, %v292_v49  ;;  %v1359_v60 = vsub.f32 %v1323_v47, %v292_v49  ;;  %v1361_v61 = vsub.f32 %v156_v63, %v292_v49  ;;  %v1363_v62 = vsub.f32 %v162_v13, %v292_v49 }
 0x100   :  { %v1366_v0 = vsub.f32 %v1325_v50, %v294_v53  ;;  %v1369_v1 = vsub.f32 %v1329_v52, %v294_v53  ;;  %v1371_v5 = vsub.f32 %v245_v2, %v294_v53  ;;  %v1373_v6 = vsub.f32 %v251_v16, %v294_v53 }
 0x101   :  { %v312_v46 = vmul.f32 %v1356_v59, %v1356_v59  ;;  %v316_v47 = vmul.f32 %v1359_v60, %v1359_v60  ;;  %v320_v63 = vmul.f32 %v1361_v61, %v1361_v61  ;;  %v324_v50 = vmul.f32 %v1363_v62, %v1363_v62 }
 0x102   :  { %v314_v52 = vmul.f32 %v1366_v0, %v1366_v0  ;;  %v318_v2 = vmul.f32 %v1369_v1, %v1369_v1  ;;  %v1388_v9 = vsub.f32 %v1327_v51, %v293_v55  ;;  %v1391_v10 = vsub.f32 %v1331_v54, %v293_v55 }
 0x103   :  { %v328_v8 = vadd.f32 %v316_v47, %v312_v46  ;;  %v1394_v11 = vsub.f32 %v1346_v4, %v293_v55  ;;  %v322_v12 = vmul.f32 %v1371_v5, %v1371_v5  ;;  %v1398_v14 = vsub.f32 %v164_v17, %v293_v55 }
 0x104   :  { %v346_v13 = vadd.f32 %v318_v2, %v314_v52  ;;  %v295_v15 = vmul.f32 0.03125, %v290_v57  ;;  %v326_v18 = vmul.f32 %v1373_v6, %v1373_v6  ;;  %v313_v51 = vmul.f32 %v1388_v9, %v1388_v9 }
 0x105   :  { %v329_v16 = vadd.f32 %v328_v8, %v320_v63  ;;  %v317_v54 = vmul.f32 %v1391_v10, %v1391_v10  ;;  %v321_v4 = vmul.f32 %v1394_v11, %v1394_v11 }
 0x106   :  { %v347_v19 = vadd.f32 %v346_v13, %v322_v12  ;;  %v1409_v21 = vsub.f32 %v1333_v56, %v295_v15  ;;  %v1412_v17 = vsub.f32 %v1337_v58, %v295_v15  ;;  %v1415_v24 = vsub.f32 %v1348_v7, %v295_v15  ;;  %v386_v13 = vpop.permute.xlu1 %385 }
 0x107   :  { %v330_v22 = vadd.f32 %v329_v16, %v324_v50  ;;  %v337_v23 = vadd.f32 %v317_v54, %v313_v51  ;;  %v1418_v25 = vsub.f32 %v1352_v20, %v295_v15  ;;  %v325_v58 = vmul.f32 %v1398_v14, %v1398_v14 }
 0x108   :  { %v348_v26 = vadd.f32 %v347_v19, %v326_v18  ;;  %v315_v27 = vmul.f32 %v1409_v21, %v1409_v21  ;;  %v319_v28 = vmul.f32 %v1412_v17, %v1412_v17  ;;  %v323_v7 = vmul.f32 %v1415_v24, %v1415_v24 }
 0x109   :  { %v331_v56 = vrot.slane %v330_v22, 4  ;;  %v338_v29 = vadd.f32 %v337_v23, %v321_v4  ;;  %v327_v34 = vmul.f32 %v1418_v25, %v1418_v25  ;;  %v378_v4 = vpop.permute.xlu0 %377 }
 0x10a   :  { %v349_v30 = vrot.slane %v348_v26, 4  ;;  %v355_v31 = vadd.f32 %v319_v28, %v315_v27 }
 0x10b   :  { %v332_v32 = vadd.f32 %v331_v56, %v330_v22  ;;  %v339_v20 = vadd.f32 %v338_v29, %v325_v58  ;;  %v426_v22 = vpop.permute.xlu1 %425 }
 0x10c   :  { %v350_v33 = vadd.f32 %v349_v30, %v348_v26  ;;  %v356_v35 = vadd.f32 %v355_v31, %v323_v7 }
 0x10d   :  { %v333_v36 = vrot.slane %v332_v32, 2  ;;  %v340_v37 = vrot.slane %v339_v20, 4  ;;  %v390_v27 = vpop.permute.xlu0 %389 }
 0x10e   :  { %v351_v38 = vrot.slane %v350_v33, 2  ;;  %v357_v39 = vadd.f32 %v356_v35, %v327_v34 }
 0x10f   :  { %v334_v40 = vadd.f32 %v333_v36, %v332_v32  ;;  %v341_v41 = vadd.f32 %v340_v37, %v339_v20  ;;  %v434_v28 = vpop.permute.xlu1 %433 }
 0x110   :  { %v352_v42 = vadd.f32 %v351_v38, %v350_v33  ;;  %v358_v43 = vrot.slane %v357_v39, 4 }
 0x111   :  { %v335_v44 = vrot.slane %v334_v40, 1  ;;  %v342_v45 = vrot.slane %v341_v41, 2 }
 0x112   :  { %v353_v49 = vrot.slane %v352_v42, 1  ;;  %v359_v53 = vadd.f32 %v358_v43, %v357_v39 }
 0x113   :  { %v336_v55 = vadd.f32 %v335_v44, %v334_v40  ;;  %v343_v57 = vadd.f32 %v342_v45, %v341_v41 }
 0x114   :  { %v354_v46 = vadd.f32 %v353_v49, %v352_v42  ;;  %v360_v47 = vrot.slane %v359_v53, 2 }
 0x115   :  { %v364_v63 = vmul.f32 0.03125, %v336_v55  ;;  %v344_v50 = vrot.slane %v343_v57, 1 }
 0x116   :  { %v366_v52 = vmul.f32 0.03125, %v354_v46  ;;  %v361_v2 = vadd.f32 %v360_v47, %v359_v53 }
 0x117   :  { %v368_v8 = vadd.f32 1e-05, %v364_v63  ;;  %v345_v12 = vadd.f32 %v344_v50, %v343_v57 }
 0x118   :  { %v370_v15 = vadd.f32 1e-05, %v366_v52  ;;  %v362_v16 = vrot.slane %v361_v2, 1 }
 0x119   :  { %1171 = vrsqrt.f32 %v368_v8  ;;  %v365_v18 = vmul.f32 0.03125, %v345_v12 }
 0x11a   :  { %1173 = vrsqrt.f32 %v370_v15  ;;  %v363_v51 = vadd.f32 %v362_v16, %v361_v2 }
 0x11b   :  { %v369_v54 = vadd.f32 1e-05, %v365_v18 }
 0x11c   :  { %v367_v19 = vmul.f32 0.03125, %v363_v51 }
 0x11d   :  { %1175 = vrsqrt.f32 %v369_v54 }
 0x11e   :  { %v371_v23 = vadd.f32 1e-05, %v367_v19 }
 0x120   :  { %1177 = vrsqrt.f32 %v371_v23 }
 0x123   :  { %v1172_v26 = vpop.eup %1171 }
 0x124   :  { %v1174_v56 = vpop.eup %1173  ;;  %v396_v58 = vmul.f32 %v1172_v26, %v382_v48  ;;  %v400_v29 = vmul.f32 %v1172_v26, %v386_v13  ;;  %v392_v30 = vmul.f32 %v1172_v26, %v378_v4  ;;  %v404_v7 = vmul.f32 %v1172_v26, %v390_v27 }
 0x125   :  { %v398_v31 = vmul.f32 %v1174_v56, %v382_v48  ;;  %v402_v32 = vmul.f32 %v1174_v56, %v386_v13  ;;  %v394_v20 = vmul.f32 %v1174_v56, %v378_v4  ;;  %v406_v33 = vmul.f32 %v1174_v56, %v390_v27 }
 0x126   :  { %v408_v34 = vmul.f32 %v392_v30, %v1356_v59  ;;  %v416_v35 = vmul.f32 %v400_v29, %v1361_v61  ;;  %v420_v36 = vmul.f32 %v404_v7, %v1363_v62  ;;  %v412_v37 = vmul.f32 %v396_v58, %v1359_v60  ;;  %v438_v62 = vpop.permute.xlu1 %437 }
 0x127   :  { %v1176_v38 = vpop.eup %1175  ;;  %v410_v39 = vmul.f32 %v394_v20, %v1366_v0  ;;  %v418_v40 = vmul.f32 %v402_v32, %v1371_v5  ;;  %v422_v41 = vmul.f32 %v406_v33, %v1373_v6  ;;  %v414_v42 = vmul.f32 %v398_v31, %v1369_v1 }
 0x128   :  { %v397_v43 = vmul.f32 %v1176_v38, %v382_v48  ;;  %v401_v44 = vmul.f32 %v1176_v38, %v386_v13  ;;  %v393_v45 = vmul.f32 %v1176_v38, %v378_v4  ;;  %v440_v49 = vadd.f32 %v426_v22, %v408_v34 }
 0x129   :  { %v442_v59 = vadd.f32 %v426_v22, %v410_v39  ;;  %v405_v53 = vmul.f32 %v1176_v38, %v390_v27  ;;  %v448_v61 = vadd.f32 %v434_v28, %v416_v35  ;;  %v450_v55 = vadd.f32 %v434_v28, %v418_v40  ;;  %v34_v39 = vld [vmem:[%s1611_s1 + $0x20] sm:$0xff]  ;;  %v35_v40 = vld [vmem:[%s1611_s1 + $0x28] sm:$0xff] }
 0x12a   :  { %v1178_v57 = vpop.eup %1177  ;;  %v409_v60 = vmul.f32 %v393_v45, %v1388_v9  ;;  %v456_v46 = vmax.f32 %v440_v49, 0.0  ;;  %v417_v0 = vmul.f32 %v401_v44, %v1394_v11  ;;  %v452_v5 = vadd.f32 %v438_v62, %v420_v36  ;;  %v430_v9 = vpop.permute.xlu0 %429 }
 0x12b   :  { %v399_v47 = vmul.f32 %v1178_v57, %v382_v48  ;;  %v403_v6 = vmul.f32 %v1178_v57, %v386_v13  ;;  %v395_v63 = vmul.f32 %v1178_v57, %v378_v4  ;;  %v458_v1 = vmax.f32 %v442_v59, 0.0  ;;  %v478_v49 = vpop.permute.xlu1 %477 }
 0x12c   :  { %v441_v50 = vadd.f32 %v426_v22, %v409_v60  ;;  %v407_v52 = vmul.f32 %v1178_v57, %v390_v27  ;;  %v449_v2 = vadd.f32 %v434_v28, %v417_v0  ;;  %v464_v8 = vmax.f32 %v448_v61, 0.0 }
 0x12d   :  { %v411_v12 = vmul.f32 %v395_v63, %v1409_v21  ;;  %v419_v15 = vmul.f32 %v403_v6, %v1415_v24  ;;  %v466_v16 = vmax.f32 %v450_v55, 0.0  ;;  %v421_v18 = vmul.f32 %v405_v53, %v1398_v14 }
 0x12e   :  { %v423_v51 = vmul.f32 %v407_v52, %v1418_v25  ;;  %v454_v11 = vadd.f32 %v438_v62, %v422_v41  ;;  %v468_v54 = vmax.f32 %v452_v5, 0.0  ;;  %v413_v48 = vmul.f32 %v397_v43, %v1391_v10  ;;  %v36_v41 = vld [vmem:[%s1611_s1 + $0x30] sm:$0xff]  ;;  %v43_v43 = vld [vmem:[%s1610_s2] sm:$0x1]  ;;  %v474_v61 = vpop.permute.xlu0 %473 }
 0x12f   :  { %v443_v13 = vadd.f32 %v426_v22, %v411_v12  ;;  %v451_v19 = vadd.f32 %v434_v28, %v419_v15  ;;  %v453_v4 = vadd.f32 %v438_v62, %v421_v18  ;;  %v415_v23 = vmul.f32 %v399_v47, %v1412_v17 }
 0x130   :  { %v455_v26 = vadd.f32 %v438_v62, %v423_v51  ;;  %v470_v27 = vmax.f32 %v454_v11, 0.0  ;;  %v444_v21 = vadd.f32 %v430_v9, %v412_v37  ;;  %v445_v56 = vadd.f32 %v430_v9, %v413_v48 }
 0x131   :  { %v446_v24 = vadd.f32 %v430_v9, %v414_v42  ;;  %v447_v58 = vadd.f32 %v430_v9, %v415_v23  ;;  %v457_v29 = vmax.f32 %v441_v50, 0.0  ;;  %v459_v14 = vmax.f32 %v443_v13, 0.0  ;;  %v37_v42 = vld [vmem:[%s1611_s1 + $0x38] sm:$0xff] }
 0x132   :  { %v460_v30 = vmax.f32 %v444_v21, 0.0  ;;  %v461_v7 = vmax.f32 %v445_v56, 0.0  ;;  %v465_v25 = vmax.f32 %v449_v2, 0.0  ;;  %v469_v31 = vmax.f32 %v453_v4, 0.0  ;;  %v486_v23 = vpop.permute.xlu0 %485 }
 0x133   :  { %v462_v32 = vmax.f32 %v446_v24, 0.0  ;;  %v463_v20 = vmax.f32 %v447_v58, 0.0  ;;  %v467_v10 = vmax.f32 %v451_v19, 0.0  ;;  %v471_v22 = vmax.f32 %v455_v26, 0.0 }
 0x134   :  { %v1116_v28 = vpack.c.bf16 %v461_v7, %v457_v29  ;;  %v1118_v33 = vpack.c.bf16 %v460_v30, %v456_v46  ;;  %v1120_v34 = vpack.c.bf16 %v469_v31, %v465_v25  ;;  %v1122_v17 = vpack.c.bf16 %v468_v54, %v464_v8 }
 0x135   :  { %v1124_v35 = vpack.c.bf16 %v463_v20, %v459_v14  ;;  %v1126_v36 = vpack.c.bf16 %v462_v32, %v458_v1  ;;  %v1128_v37 = vpack.c.bf16 %v471_v22, %v467_v10  ;;  %v1130_v38 = vpack.c.bf16 %v470_v27, %v466_v16  ;;  %v482_v1 = vpop.permute.xlu1 %481 }
 0x136   :  { %1117 = vmatprep.subr.bf16.mxu0 %v1116_v28  ;;  %v1194_v44 = vmov 6  }
 0x137   :  { %1125 = vmatprep.subr.bf16.mxu1 %v1124_v35  ;;  %1119 = vmatpush1.bf16.msra.mxu0 %v1118_v33 }
 0x138   :  { %1127 = vmatpush1.bf16.msra.mxu1 %v1126_v36  ;;  %1121 = vmatprep.subr.bf16.mxu0 %v1120_v34 }
 0x139   :  { %1129 = vmatprep.subr.bf16.mxu1 %v1128_v37  ;;  %1169 = vset.pattern.permute.xlu1 %v1194_v44 }
 0x13a   :  { %1170 = vset.pattern.permute.xlu0 %v1194_v44  ;;  %896 = vperm.xlu1 %1169, %v43_v43  }
 0x13b   :  { %1123 = vmatpush1.bf16.msra.mxu0 %v1122_v17 }
 0x13c   :  { %1131 = vmatpush1.bf16.msra.mxu1 %v1130_v38 }
 0x13e   :  { %1090 = vmatmul.mubr.msk.f32.vlgmr.msra.gmra.mrb[8].mxu0 %vm64_vm0, %v34_v39 }
 0x13f   :  { %1094 = vmatmul.mubr.msk.f32.vlgmr.msra.gmra.mrb[8].mxu1 %vm64_vm0, %v34_v39  ;;  %570 = vmatprep.mubr.f32.mxu0 %v1187_v3 }
 0x140   :  { %659 = vmatprep.mubr.f32.mxu1 %v1187_v3 }
 0x142   :  { %1091 = vmatmul.mubr.msk.f32.gmra.mrb[10].mxu0 %vm64_vm0, %v35_v40 }
 0x143   :  { %1095 = vmatmul.mubr.msk.f32.gmra.mrb[10].mxu1 %vm64_vm0, %v35_v40  ;;  %576 = vmatprep.mubr.f32.mxu0 %v1187_v3 }
 0x144   :  { %665 = vmatprep.mubr.f32.mxu1 %v1187_v3 }
 0x146   :  { %1092 = vmatmul.mubr.msk.f32.gmra.mrb[12].mxu0 %vm64_vm0, %v36_v41 }
 0x147   :  { %1096 = vmatmul.mubr.msk.f32.gmra.mrb[12].mxu1 %vm64_vm0, %v36_v41  ;;  %582 = vmatprep.mubr.f32.mxu0 %v1187_v3 }
 0x148   :  { %671 = vmatprep.mubr.f32.mxu1 %v1187_v3 }
 0x14a   :  { %1093 = vmatmul.mubr.msk.f32.gmra.mrb[14].mxu0 %vm64_vm0, %v37_v42 }
 0x14b   :  { %1097 = vmatmul.mubr.msk.f32.gmra.mrb[14].mxu1 %vm64_vm0, %v37_v42  ;;  %966 = vmatprep.mubr.f32.mxu0 %v1187_v3 }
 0x14c   :  { %1037 = vmatprep.mubr.f32.mxu1 %v1187_v3 }
 0x211   :  { %v566_v45 = vpop.f32.mrb[8].mxu0 }
 0x212   :  { %v655_v59 = vpop.f32.mrb[8].mxu1  ;;  %v568_v53 = vpop.f32.mrb[9].mxu0  ;;  %v1477_v57 = vadd.f32 %v566_v45, %v474_v61 }
 0x213   :  { %v657_v55 = vpop.f32.mrb[9].mxu1  ;;  %v1481_v0 = vadd.f32 %v655_v59, %v474_v61  ;;  %v1483_v5 = vadd.f32 %v568_v53, %v474_v61 }
 0x214   :  { %v1489_v50 = vadd.f32 %v657_v55, %v474_v61 }
 0x215   :  { %v572_v62 = vpop.f32.mrb[10].mxu0 }
 0x216   :  { %v1479_v60 = vadd.f32 %v572_v62, %v478_v49  ;;  %v661_v3 = vpop.f32.mrb[10].mxu1  ;;  %v574_v46 = vpop.f32.mrb[11].mxu0 }
 0x217   :  { %v1485_v47 = vadd.f32 %v661_v3, %v478_v49  ;;  %v1487_v6 = vadd.f32 %v574_v46, %v478_v49  ;;  %v663_v63 = vpop.f32.mrb[11].mxu1 }
 0x218   :  { %v678_v52 = vadd.f32 %v1479_v60, %v1477_v57  ;;  %v1493_v2 = vadd.f32 %v663_v63, %v478_v49 }
 0x219   :  { %v696_v8 = vadd.f32 %v1485_v47, %v1481_v0  ;;  %v687_v12 = vadd.f32 %v1487_v6, %v1483_v5  ;;  %v578_v15 = vpop.f32.mrb[12].mxu0 }
 0x21a   :  { %v705_v16 = vadd.f32 %v1493_v2, %v1489_v50  ;;  %v579_v18 = vadd.f32 %v578_v15, %v482_v1  ;;  %v667_v9 = vpop.f32.mrb[12].mxu1  ;;  %v580_v51 = vpop.f32.mrb[13].mxu0 }
 0x21b   :  { %v668_v11 = vadd.f32 %v667_v9, %v482_v1  ;;  %v1501_v54 = vadd.f32 %v580_v51, %v482_v1  ;;  %v669_v48 = vpop.f32.mrb[13].mxu1 }
 0x21c   :  { %v679_v13 = vadd.f32 %v678_v52, %v579_v18  ;;  %v1503_v19 = vadd.f32 %v669_v48, %v482_v1 }
 0x21d   :  { %v697_v4 = vadd.f32 %v696_v8, %v668_v11  ;;  %v688_v26 = vadd.f32 %v687_v12, %v1501_v54  ;;  %v584_v27 = vpop.f32.mrb[14].mxu0 }
 0x21e   :  { %v706_v21 = vadd.f32 %v705_v16, %v1503_v19  ;;  %v585_v56 = vadd.f32 %v584_v27, %v486_v23  ;;  %v673_v24 = vpop.f32.mrb[14].mxu1  ;;  %v586_v58 = vpop.f32.mrb[15].mxu0 }
 0x21f   :  { %v674_v29 = vadd.f32 %v673_v24, %v486_v23  ;;  %v587_v14 = vadd.f32 %v586_v58, %v486_v23  ;;  %v675_v30 = vpop.f32.mrb[15].mxu1 }
 0x220   :  { %v680_v7 = vadd.f32 %v679_v13, %v585_v56  ;;  %v1507_v25 = vadd.f32 %v675_v30, %v486_v23 }
 0x221   :  { %v698_v31 = vadd.f32 %v697_v4, %v674_v29  ;;  %v689_v32 = vadd.f32 %v688_v26, %v587_v14 }
 0x222   :  { %v681_v20 = vrot.slane %v680_v7, 4  ;;  %v707_v10 = vadd.f32 %v706_v21, %v1507_v25 }
 0x223   :  { %v699_v22 = vrot.slane %v698_v31, 4  ;;  %v690_v28 = vrot.slane %v689_v32, 4 }
 0x224   :  { %v682_v33 = vadd.f32 %v681_v20, %v680_v7  ;;  %v708_v34 = vrot.slane %v707_v10, 4 }
 0x225   :  { %v700_v17 = vadd.f32 %v699_v22, %v698_v31  ;;  %v691_v35 = vadd.f32 %v690_v28, %v689_v32 }
 0x226   :  { %v683_v36 = vrot.slane %v682_v33, 2  ;;  %v709_v37 = vadd.f32 %v708_v34, %v707_v10 }
 0x227   :  { %v701_v38 = vrot.slane %v700_v17, 2  ;;  %v692_v39 = vrot.slane %v691_v35, 2 }
 0x228   :  { %v684_v40 = vadd.f32 %v683_v36, %v682_v33  ;;  %v710_v41 = vrot.slane %v709_v37, 2 }
 0x229   :  { %v702_v42 = vadd.f32 %v701_v38, %v700_v17  ;;  %v693_v43 = vadd.f32 %v692_v39, %v691_v35 }
 0x22a   :  { %v685_v44 = vrot.slane %v684_v40, 1  ;;  %v711_v45 = vadd.f32 %v710_v41, %v709_v37 }
 0x22b   :  { %v703_v49 = vrot.slane %v702_v42, 1  ;;  %v694_v59 = vrot.slane %v693_v43, 1 }
 0x22c   :  { %v686_v53 = vadd.f32 %v685_v44, %v684_v40  ;;  %v712_v61 = vrot.slane %v711_v45, 1 }
 0x22d   :  { %v704_v55 = vadd.f32 %v703_v49, %v702_v42  ;;  %v695_v62 = vadd.f32 %v694_v59, %v693_v43 }
 0x22e   :  { %v714_v3 = vmul.f32 0.03125, %v686_v53  ;;  %v713_v1 = vadd.f32 %v712_v61, %v711_v45 }
 0x22f   :  { %v716_v46 = vmul.f32 0.03125, %v704_v55  ;;  %v715_v63 = vmul.f32 0.03125, %v695_v62  ;;  %v800_v55 = vpop.permute.xlu1 %799 }
 0x230   :  { %v1511_v52 = vsub.f32 %v1477_v57, %v714_v3  ;;  %v1514_v8 = vsub.f32 %v1479_v60, %v714_v3  ;;  %v1516_v12 = vsub.f32 %v579_v18, %v714_v3  ;;  %v1518_v15 = vsub.f32 %v585_v56, %v714_v3 }
 0x231   :  { %v1521_v16 = vsub.f32 %v1481_v0, %v716_v46  ;;  %v1524_v9 = vsub.f32 %v1485_v47, %v716_v46  ;;  %v1526_v51 = vsub.f32 %v668_v11, %v716_v46  ;;  %v1528_v48 = vsub.f32 %v674_v29, %v716_v46 }
 0x232   :  { %v734_v57 = vmul.f32 %v1511_v52, %v1511_v52  ;;  %v738_v60 = vmul.f32 %v1514_v8, %v1514_v8  ;;  %v742_v18 = vmul.f32 %v1516_v12, %v1516_v12  ;;  %v746_v0 = vmul.f32 %v1518_v15, %v1518_v15 }
 0x233   :  { %v736_v47 = vmul.f32 %v1521_v16, %v1521_v16  ;;  %v740_v11 = vmul.f32 %v1524_v9, %v1524_v9  ;;  %v1543_v4 = vsub.f32 %v1483_v5, %v715_v63  ;;  %v1546_v23 = vsub.f32 %v1487_v6, %v715_v63 }
 0x234   :  { %v750_v13 = vadd.f32 %v738_v60, %v734_v57  ;;  %v1549_v26 = vsub.f32 %v1501_v54, %v715_v63  ;;  %v744_v27 = vmul.f32 %v1526_v51, %v1526_v51  ;;  %v1553_v56 = vsub.f32 %v587_v14, %v715_v63 }
 0x235   :  { %v768_v21 = vadd.f32 %v740_v11, %v736_v47  ;;  %v717_v24 = vmul.f32 0.03125, %v713_v1  ;;  %v748_v29 = vmul.f32 %v1528_v48, %v1528_v48  ;;  %v735_v5 = vmul.f32 %v1543_v4, %v1543_v4 }
 0x236   :  { %v751_v58 = vadd.f32 %v750_v13, %v742_v18  ;;  %v739_v6 = vmul.f32 %v1546_v23, %v1546_v23  ;;  %v743_v54 = vmul.f32 %v1549_v26, %v1549_v26 }
 0x237   :  { %v769_v30 = vadd.f32 %v768_v21, %v744_v27  ;;  %v1564_v7 = vsub.f32 %v1489_v50, %v717_v24  ;;  %v1567_v14 = vsub.f32 %v1493_v2, %v717_v24  ;;  %v1570_v20 = vsub.f32 %v1503_v19, %v717_v24  ;;  %v808_v27 = vpop.permute.xlu1 %807 }
 0x238   :  { %v752_v31 = vadd.f32 %v751_v58, %v746_v0  ;;  %v759_v32 = vadd.f32 %v739_v6, %v735_v5  ;;  %v1573_v10 = vsub.f32 %v1507_v25, %v717_v24  ;;  %v747_v2 = vmul.f32 %v1553_v56, %v1553_v56 }
 0x239   :  { %v770_v22 = vadd.f32 %v769_v30, %v748_v29  ;;  %v737_v28 = vmul.f32 %v1564_v7, %v1564_v7  ;;  %v741_v33 = vmul.f32 %v1567_v14, %v1567_v14  ;;  %v745_v19 = vmul.f32 %v1570_v20, %v1570_v20 }
 0x23a   :  { %v753_v50 = vrot.slane %v752_v31, 4  ;;  %v760_v34 = vadd.f32 %v759_v32, %v743_v54  ;;  %v749_v38 = vmul.f32 %v1573_v10, %v1573_v10 }
 0x23b   :  { %v771_v17 = vrot.slane %v770_v22, 4  ;;  %v777_v35 = vadd.f32 %v741_v33, %v737_v28  ;;  %v812_v30 = vpop.permute.xlu1 %811 }
 0x23c   :  { %v754_v36 = vadd.f32 %v753_v50, %v752_v31  ;;  %v761_v25 = vadd.f32 %v760_v34, %v747_v2  ;;  %v804_v31 = vpop.permute.xlu0 %803 }
 0x23d   :  { %v772_v37 = vadd.f32 %v771_v17, %v770_v22  ;;  %v778_v39 = vadd.f32 %v777_v35, %v745_v19 }
 0x23e   :  { %v755_v40 = vrot.slane %v754_v36, 2  ;;  %v762_v41 = vrot.slane %v761_v25, 4 }
 0x23f   :  { %v773_v42 = vrot.slane %v772_v37, 2  ;;  %v779_v43 = vadd.f32 %v778_v39, %v749_v38  ;;  %v852_v32 = vpop.permute.xlu1 %851 }
 0x240   :  { %v756_v44 = vadd.f32 %v755_v40, %v754_v36  ;;  %v763_v45 = vadd.f32 %v762_v41, %v761_v25 }
 0x241   :  { %v774_v49 = vadd.f32 %v773_v42, %v772_v37  ;;  %v780_v59 = vrot.slane %v779_v43, 4  ;;  %v848_v42 = vpop.permute.xlu0 %847 }
 0x242   :  { %v757_v53 = vrot.slane %v756_v44, 1  ;;  %v764_v61 = vrot.slane %v763_v45, 2 }
 0x243   :  { %v775_v62 = vrot.slane %v774_v49, 1  ;;  %v781_v3 = vadd.f32 %v780_v59, %v779_v43 }
 0x244   :  { %v758_v46 = vadd.f32 %v757_v53, %v756_v44  ;;  %v765_v63 = vadd.f32 %v764_v61, %v763_v45  ;;  %v856_v44 = vpop.permute.xlu1 %855 }
 0x245   :  { %v776_v1 = vadd.f32 %v775_v62, %v774_v49  ;;  %v782_v57 = vrot.slane %v781_v3, 2 }
 0x246   :  { %v786_v60 = vmul.f32 0.03125, %v758_v46  ;;  %v766_v18 = vrot.slane %v765_v63, 1 }
 0x247   :  { %v788_v0 = vmul.f32 0.03125, %v776_v1  ;;  %v783_v47 = vadd.f32 %v782_v57, %v781_v3 }
 0x248   :  { %v790_v11 = vadd.f32 1e-05, %v786_v60  ;;  %v767_v13 = vadd.f32 %v766_v18, %v765_v63 }
 0x249   :  { %v792_v21 = vadd.f32 1e-05, %v788_v0  ;;  %v784_v24 = vrot.slane %v783_v47, 1 }
 0x24a   :  { %1179 = vrsqrt.f32 %v790_v11  ;;  %v787_v58 = vmul.f32 0.03125, %v767_v13 }
 0x24b   :  { %1181 = vrsqrt.f32 %v792_v21  ;;  %v785_v29 = vadd.f32 %v784_v24, %v783_v47 }
 0x24c   :  { %v791_v5 = vadd.f32 1e-05, %v787_v58 }
 0x24d   :  { %v789_v6 = vmul.f32 0.03125, %v785_v29 }
 0x24e   :  { %1183 = vrsqrt.f32 %v791_v5 }
 0x24f   :  { %v793_v54 = vadd.f32 1e-05, %v789_v6 }
 0x251   :  { %1185 = vrsqrt.f32 %v793_v54 }
 0x254   :  { %v1180_v22 = vpop.eup %1179 }
 0x255   :  { %v1182_v28 = vpop.eup %1181  ;;  %v814_v33 = vmul.f32 %v1180_v22, %v800_v55  ;;  %v822_v50 = vmul.f32 %v1180_v22, %v808_v27  ;;  %v826_v2 = vmul.f32 %v1180_v22, %v812_v30  ;;  %v818_v34 = vmul.f32 %v1180_v22, %v804_v31 }
 0x256   :  { %v816_v17 = vmul.f32 %v1182_v28, %v800_v55  ;;  %v824_v19 = vmul.f32 %v1182_v28, %v808_v27  ;;  %v828_v35 = vmul.f32 %v1182_v28, %v812_v30  ;;  %v820_v36 = vmul.f32 %v1182_v28, %v804_v31 }
 0x257   :  { %v834_v25 = vmul.f32 %v818_v34, %v1514_v8  ;;  %v830_v37 = vmul.f32 %v814_v33, %v1511_v52  ;;  %v838_v38 = vmul.f32 %v822_v50, %v1516_v12  ;;  %v842_v39 = vmul.f32 %v826_v2, %v1518_v15 }
 0x258   :  { %v1184_v40 = vpop.eup %1183  ;;  %v836_v41 = vmul.f32 %v820_v36, %v1524_v9  ;;  %v832_v43 = vmul.f32 %v816_v17, %v1521_v16  ;;  %v840_v45 = vmul.f32 %v824_v19, %v1526_v51  ;;  %v844_v49 = vmul.f32 %v828_v35, %v1528_v48 }
 0x259   :  { %v815_v59 = vmul.f32 %v1184_v40, %v800_v55  ;;  %v823_v53 = vmul.f32 %v1184_v40, %v808_v27  ;;  %v827_v8 = vmul.f32 %v1184_v40, %v812_v30  ;;  %v819_v61 = vmul.f32 %v1184_v40, %v804_v31 }
 0x25a   :  { %v866_v52 = vadd.f32 %v852_v32, %v834_v25  ;;  %v868_v62 = vadd.f32 %v852_v32, %v836_v41  ;;  %v862_v12 = vadd.f32 %v848_v42, %v830_v37  ;;  %v864_v3 = vadd.f32 %v848_v42, %v832_v43  ;;  %v38_v41 = vld [vmem:[%s1611_s1 + $0x40] sm:$0x1] }
 0x25b   :  { %v1186_v15 = vpop.eup %1185  ;;  %v835_v46 = vmul.f32 %v819_v61, %v1546_v23  ;;  %v831_v9 = vmul.f32 %v815_v59, %v1543_v4  ;;  %v839_v16 = vmul.f32 %v823_v53, %v1549_v26  ;;  %v870_v63 = vadd.f32 %v856_v44, %v838_v38  ;;  %v860_v23 = vpop.permute.xlu0 %859 }
 0x25c   :  { %v817_v1 = vmul.f32 %v1186_v15, %v800_v55  ;;  %v825_v51 = vmul.f32 %v1186_v15, %v808_v27  ;;  %v829_v57 = vmul.f32 %v1186_v15, %v812_v30  ;;  %v821_v48 = vmul.f32 %v1186_v15, %v804_v31 }
 0x25d   :  { %v867_v60 = vadd.f32 %v852_v32, %v835_v46  ;;  %v882_v18 = vmax.f32 %v866_v52, 0.0  ;;  %v884_v0 = vmax.f32 %v868_v62, 0.0  ;;  %v863_v47 = vadd.f32 %v848_v42, %v831_v9 }
 0x25e   :  { %v837_v11 = vmul.f32 %v821_v48, %v1567_v14  ;;  %v833_v13 = vmul.f32 %v817_v1, %v1564_v7  ;;  %v878_v21 = vmax.f32 %v862_v12, 0.0  ;;  %v880_v24 = vmax.f32 %v864_v3, 0.0 }
 0x25f   :  { %v841_v4 = vmul.f32 %v825_v51, %v1570_v20  ;;  %v871_v58 = vadd.f32 %v856_v44, %v839_v16  ;;  %v872_v26 = vadd.f32 %v856_v44, %v840_v45  ;;  %v886_v29 = vmax.f32 %v870_v63, 0.0  ;;  %v897_v45 = vpop.permute.xlu1 %896 }
 0x260   :  { %v869_v55 = vadd.f32 %v852_v32, %v837_v11  ;;  %v865_v27 = vadd.f32 %v848_v42, %v833_v13  ;;  %v843_v5 = vmul.f32 %v827_v8, %v1553_v56  ;;  %v845_v6 = vmul.f32 %v829_v57, %v1573_v10 }
 0x261   :  { %v873_v30 = vadd.f32 %v856_v44, %v841_v4  ;;  %v888_v54 = vmax.f32 %v872_v26, 0.0  ;;  %v874_v31 = vadd.f32 %v860_v23, %v842_v39  ;;  %v876_v14 = vadd.f32 %v860_v23, %v844_v49 }
 0x262   :  { %v875_v22 = vadd.f32 %v860_v23, %v843_v5  ;;  %v877_v7 = vadd.f32 %v860_v23, %v845_v6  ;;  %v879_v28 = vmax.f32 %v863_v47, 0.0  ;;  %v883_v33 = vmax.f32 %v867_v60, 0.0 }
 0x263   :  { %v890_v50 = vmax.f32 %v874_v31, 0.0  ;;  %v892_v2 = vmax.f32 %v876_v14, 0.0  ;;  %v881_v20 = vmax.f32 %v865_v27, 0.0  ;;  %v885_v34 = vmax.f32 %v869_v55, 0.0 }
 0x264   :  { %v891_v17 = vmax.f32 %v875_v22, 0.0  ;;  %v893_v19 = vmax.f32 %v877_v7, 0.0  ;;  %v1132_v32 = vpack.c.bf16 %v883_v33, %v879_v28  ;;  %v1134_v35 = vpack.c.bf16 %v882_v18, %v878_v21 }
 0x265   :  { %v1138_v36 = vpack.c.bf16 %v890_v50, %v886_v29  ;;  %v1146_v56 = vpack.c.bf16 %v892_v2, %v888_v54  ;;  %v1140_v25 = vpack.c.bf16 %v885_v34, %v881_v20  ;;  %v1142_v10 = vpack.c.bf16 %v884_v0, %v880_v24 }
 0x266   :  { %1133 = vmatprep.subr.bf16.mxu0 %v1132_v32  ;;  %v887_v37 = vmax.f32 %v871_v58, 0.0  ;;  %v889_v38 = vmax.f32 %v873_v30, 0.0  ;;  %v1195_v42 = vmov 1966171168   ;;  %v1053_v44 = vlaneseq }
 0x267   :  { %1141 = vmatprep.subr.bf16.mxu1 %v1140_v25  ;;  %1135 = vmatpush1.bf16.msra.mxu0 %v1134_v35  ;;  %v1051_v43 = vunpack.c.l.s4 %v1195_v42 }
 0x268   :  { %1143 = vmatpush1.bf16.msra.mxu1 %v1142_v10  ;;  %v1136_v39 = vpack.c.bf16 %v891_v17, %v887_v37  ;;  %v1144_v40 = vpack.c.bf16 %v893_v19, %v889_v38  ;;  %v1054_v59 = vshrl.u32 %v1053_v44, 7  ;;  %vm1075_vm1 = vcmp.lt.s32.totalorder %v1053_v44, 512 }
 0x269   :  { %v1052_v49 = vunpack.c.0.s8 %v1051_v43 }
 0x26a   :  { %1137 = vmatprep.subr.bf16.mxu0 %v1136_v39  ;;  %1145 = vmatprep.subr.bf16.mxu1 %v1144_v40 }
 0x26b   :  { %1139 = vmatpush1.bf16.msra.mxu0 %v1138_v36  ;;  %v1055_v3 = vsub.s32 %v1052_v49, %v1054_v59 }
 0x26c   :  { %1147 = vmatpush1.bf16.msra.mxu1 %v1146_v56 }
 0x26e   :  { %1098 = vmatmul.mubr.msk.f32.vlgmr.msra.gmra.mrb[16].mxu0 %vm64_vm0, %v38_v41 }
 0x26f   :  { %1099 = vmatmul.mubr.msk.f32.vlgmr.msra.gmra.mrb[16].mxu1 %vm64_vm0, %v38_v41 }
 0x341   :  { %v968_v53 = vpop.f32.mrb[16].mxu0 }
 0x342   :  { %v1039_v8 = vpop.f32.mrb[16].mxu1  ;;  %v969_v61 = vadd.f32 %v968_v53, %v897_v45  ;;  %v970_v52 = vpop.f32.mrb[17].mxu0 }
 0x343   :  { %v1040_v62 = vadd.f32 %v1039_v8, %v897_v45  ;;  %v971_v12 = vadd.f32 %v970_v52, %v897_v45  ;;  %v1041_v15 = vpop.f32.mrb[17].mxu1 }
 0x344   :  { %v1042_v46 = vadd.f32 %v1041_v15, %v897_v45 }
 0x345   :  { %v1048_v9 = vcombine.low %v969_v61, %v971_v12 }
 0x346   :  { %v1049_v16 = vcombine.low %v1040_v62, %v1042_v46 }
 0x347   :  { %v1056_v63 = vrot.slane %v1048_v9, %v1055_v3 }
 0x348   :  { %v1063_v1 = vrot.slane %v1049_v16, %v1055_v3 }
 0x34a   :  { %v1064_v51 = vcombine.low %v1056_v63, %v1063_v1 }
 0x34c   :  { %v1071_v57 = vrot.slane %v1064_v51, %v1055_v3 }
 0x34e   :  { %1077 = vst.msk [vmem:[%s1612_s3] sm:$0xf] %vm1075_vm1, %v1071_v57 }

</bundles_post_ra>
